<compile_context>
chip_gen: v7x
topology: tpu7x:2x2x1
jax: 0.10.0
libtpu: 0.0.40
codegen_flags: <defaults>
</compile_context>

<pallas_src>
import jax
import jax.numpy as jnp
from jax.experimental import pallas as pl
from jax.experimental.pallas import tpu as pltpu


def square_relu_kernel(x_ref, o_ref):
    # Pure VPU work on the current (block_rows, lane) tile.
    # relu then square, in the input dtype (matches the PyTorch reference).
    v = jnp.maximum(x_ref[...], 0)
    o_ref[...] = v * v


def _tpu_generation():
    """Best-effort TPU generation from device_kind ('TPU v6e' -> 6)."""
    try:
        kind = jax.devices()[0].device_kind.lower()
    except Exception:
        return 0
    for gen in (7, 6, 5, 4):
        if str(gen) in kind:
            return gen
    return 0


def _sublane_multiple(dtype):
    # Sublane packing: 8 rows for 32-bit, 16 for 16-bit, 32 for 8-bit dtypes.
    itemsize = jnp.dtype(dtype).itemsize
    return max(8, 8 * (4 // max(1, itemsize)))


def square_relu(x, *, tile_bytes=None, donate=False):
    """Elementwise relu(x)**2 for an arbitrarily shaped array.

    The array is *reshaped* (never padded or copied) into a lane-dense
    (rows, lane) slab:
      * if x.size is a multiple of 128, lane is the largest of
        {2048, 1024, 512, 256, 128} dividing x.size, so every vld/vst is an
        unmasked 128-multiple lane-dense access;
      * otherwise the original trailing dim is kept as the lane dim (rare
        ragged path; masked stores), still with no extra HBM pass.
    Row counts that don't divide the row tile are handled by Pallas's
    boundary-block masking, so no HBM pad / slice passes are ever issued.
    """
    orig_shape = x.shape
    dtype = x.dtype
    n = x.size
    if n == 0:
        return x
    itemsize = jnp.dtype(dtype).itemsize
    sub = _sublane_multiple(dtype)

    # ---- lane-dense 2-D presentation (pure reshape, no data movement) -------
    if n % 128 == 0:
        lane = 128
        for cand in (2048, 1024, 512, 256):
            if n % cand == 0:
                lane = cand
                break
    else:
        # Ragged total size: keep the trailing dim as the lane dim so the
        # reshape stays free; the final (partial) row tile is masked by Pallas.
        lane = orig_shape[-1] if x.ndim >= 1 else 1
    rows = n // lane
    x2d = x.reshape(rows, lane)

    # ---- tile sizing ---------------------------------------------------------
    gen = _tpu_generation()
    if tile_bytes is None:
        # ~2 MiB tiles everywhere (near the HBM roofline in streaming sweeps);
        # ~4 MiB on v7x where 3.2 TB/s HBM makes per-step overhead dominant.
        tile_bytes = (4 << 20) if gen >= 7 else (2 << 20)
    br = max(1, tile_bytes // max(1, lane * itemsize))
    if br >= rows:
        br = rows                          # single row tile (full dim is legal)
    else:
        br = max(sub, (br // sub) * sub)   # dtype-aligned sublane tiles
    grid = pl.cdiv(rows, br)

    # Deeper input buffering on v7x keeps the DMA issue ahead of the very
    # short per-tile compute; resident buffers stay well under scoped VMEM.
    in_spec_kwargs = {}
    if gen >= 7 and grid >= 3:
        in_spec_kwargs["pipeline_mode"] = pl.Buffered(3)

    out = pl.pallas_call(
        square_relu_kernel,
        out_shape=jax.ShapeDtypeStruct((rows, lane), dtype),
        grid_spec=pltpu.PrefetchScalarGridSpec(
            num_scalar_prefetch=0,
            grid=(grid,),
            in_specs=[pl.BlockSpec((br, lane), lambda i: (i, 0),
                                   **in_spec_kwargs)],
            out_specs=pl.BlockSpec((br, lane), lambda i: (i, 0)),
        ),
        compiler_params=pltpu.CompilerParams(
            dimension_semantics=("parallel",),   # shards across v7x's 2 TCs
        ),
        cost_estimate=pl.CostEstimate(
            flops=2 * n, transcendentals=0, bytes_accessed=2 * n * itemsize),
        input_output_aliases=({0: 0} if donate else {}),
    )(x2d)

    return out.reshape(orig_shape)


def reference(x):
    return jnp.maximum(x, 0) ** 2


if __name__ == "__main__":
    key = jax.random.PRNGKey(0)
    k1, k2, k3, k4, k5 = jax.random.split(key, 5)

    # 1) Small NCHW activation shape consistent with the module's usage.
    x = jax.random.normal(k1, (2, 4, 16, 16), jnp.float32)
    y = jax.block_until_ready(square_relu(x))
    assert y.shape == x.shape and y.dtype == x.dtype
    assert jnp.allclose(y, reference(x), rtol=1e-6, atol=1e-6), \
        f"max abs err = {jnp.max(jnp.abs(y - reference(x)))}"

    # 2) Larger shape: grid > 1 with a partial (masked) final row tile,
    #    no padding or slicing in HBM.
    x_big = jax.random.normal(k2, (2, 3, 384, 512), jnp.float32)
    y_big = jax.block_until_ready(square_relu(x_big))
    assert jnp.allclose(y_big, reference(x_big), rtol=1e-6, atol=1e-6), \
        f"max abs err (big) = {jnp.max(jnp.abs(y_big - reference(x_big)))}"

    # 3) Odd, non-128-aligned shape: ragged path (still zero extra HBM passes).
    x_odd = jax.random.normal(k3, (3, 5, 7, 11), jnp.float32)
    y_odd = jax.block_until_ready(square_relu(x_odd))
    assert jnp.allclose(y_odd, reference(x_odd), rtol=1e-6, atol=1e-6), \
        f"max abs err (odd) = {jnp.max(jnp.abs(y_odd - reference(x_odd)))}"

    # 4) bf16 activations: exercises the 16-row sublane alignment path.
    x_bf = jax.random.normal(k4, (2, 8, 256, 512), jnp.float32).astype(jnp.bfloat16)
    y_bf = jax.block_until_ready(square_relu(x_bf))
    err = jnp.max(jnp.abs(y_bf.astype(jnp.float32)
                          - reference(x_bf).astype(jnp.float32)))
    assert err < 1e-2, f"bf16 mismatch, max abs err = {err}"

    # 5) Donated-input path (input_output_aliases={0: 0}).
    x_d = jax.random.normal(k5, (2, 4, 16, 16), jnp.float32)
    ref_d = jax.block_until_ready(reference(x_d))
    y_d = jax.block_until_ready(square_relu(x_d, donate=True))
    del x_d  # do not reuse a (potentially) donated buffer
    assert jnp.allclose(y_d, ref_d, rtol=1e-6, atol=1e-6), \
        f"max abs err (donated) = {jnp.max(jnp.abs(y_d - ref_d))}"

    print("KERNEL_OK")
</pallas_src>

<mosaic_0001>
module attributes {stable_mosaic.version = 11 : i64} {
  func.func @square_relu_kernel(%arg0: i32, %arg1: memref<1x2048xf32, #tpu.memory_space<vmem>>, %arg2: memref<1x2048xf32, #tpu.memory_space<vmem>>) attributes {dimension_semantics = [#tpu.dimension_semantics<parallel>], iteration_bounds = array<i64: 1>, scalar_prefetch = 0 : i64, scratch_operands = 0 : i64, tpu.core_type = #tpu.core_type<tc>, window_params = [{transform_indices = @transform_0, window_bounds = array<i64: 1, 2048>}, {transform_indices = @transform_1, window_bounds = array<i64: 1, 2048>}]} {
    %c0 = arith.constant 0 : index
    %c0_0 = arith.constant 0 : index
    %0 = vector.load %arg1[%c0, %c0_0] : memref<1x2048xf32, #tpu.memory_space<vmem>>, vector<1x2048xf32>
    %cst = arith.constant 0.000000e+00 : f32
    %1 = vector.broadcast %cst : f32 to vector<1x2048xf32>
    %2 = arith.maximumf %0, %1 : vector<1x2048xf32>
    %3 = arith.mulf %2, %2 : vector<1x2048xf32>
    %c0_1 = arith.constant 0 : index
    %c0_2 = arith.constant 0 : index
    %4 = vector.load %arg2[%c0_1, %c0_2] : memref<1x2048xf32, #tpu.memory_space<vmem>>, vector<1x2048xf32>
    tpu.vector_store %arg2[%c0_1, %c0_2], %3 {strides = array<i32>} : memref<1x2048xf32, #tpu.memory_space<vmem>>, vector<1x2048xf32>,
    return
  }
  func.func @transform_0(%arg0: i32) -> (i32, i32) {
    %c0_i32 = arith.constant 0 : i32
    %c0_i32_0 = arith.constant 0 : i32
    return %arg0, %c0_i32 : i32, i32
  }
  func.func @transform_1(%arg0: i32) -> (i32, i32) {
    %c0_i32 = arith.constant 0 : i32
    %c0_i32_0 = arith.constant 0 : i32
    return %arg0, %c0_i32 : i32, i32
  }
}

</mosaic_0001>

<bundles_post_ra>
// kernel: tpu_custom_call.1
= control target key start
LH: loop header
LB: loop body
LE: loop exit
PB: predicated region body
PF: predicated region fallthrough
CT: control target
= control target key end

     0   :  { %6 = vsyncpa [#allocation3], 0  ;;  %s130_s0 = inlined_call_operand.hbm [shape: f32[1,2048], index: 0, kind: input, shape index: {}]   ;;  %s131_s1 = inlined_call_operand.hbm [shape: f32[1,2048], index: 1, kind: output, shape index: {}]  }
   0x1   :  { %7 = vsyncpa [#allocation4], 0  ;;  %s94_s6 = smov [#allocation2]   ;;  %s46_s10 = scalar_lea.hbm %s130_s0, 256 }
   0x2   :  { %s14_s7 = sshll.u32 %s94_s6, 4  ;;  %p47_p0 = scmp.ne.s32.totalorder %s130_s0, %s46_s10  ;;  %s15_s7 = int_to_ptr.vmem [resolvable:$true] %s14_s7 }
   0x3   :  { %p50_p1 = scmp.lt.u32.totalorder %s46_s10, %s130_s0 }
   0x5   :  { %p52_p2 = pnand %p50_p1, %p47_p0 }
   0x7   :  { %55 = shalt.err (!%p52_p2)
}
   0x8   :  { %s56_s15 = scalar_lea.vmem %s15_s7, 256  ;;  %p61_p4 = scmp.lt.s32.totalorder %s15_s7, %s15_s7 }
   0x9   :  { %p57_p3 = scmp.ne.s32.totalorder %s15_s7, %s56_s15  ;;  %p62_p5 = scmp.lt.s32.totalorder %s56_s15, %s56_s15 }
   0xb   :  { %p63_p6 = por %p62_p5, %p61_p4 }
   0xd   :  { %p64_p7 = pnand %p63_p6, %p57_p3 }
   0xf   :  { %67 = shalt.err (!%p64_p7)
}
  0x10   :  { %17 = dma.hbm_to_vmem [thread:$0]  %s130_s0, 256, %s15_s7, [#allocation3]  }
  0x11   :  { %90 = dma.done.wait [#allocation3], 256  }
  0x12   :  { %91 = vsyncadd [#allocation3], 4294967040  ;;  %v21_v0 = vld [vmem:[#allocation2] sm:$0xff]  ;;  %v22_v1 = vld [vmem:[#allocation2 + $0x8] sm:$0xff]  ;;  %s95_s18 = smov [#allocation5]  }
  0x13   :  { %s35_s19 = sshll.u32 %s95_s18, 4  ;;  %v23_v2 = vmax.f32 %v21_v0, 0.0  ;;  %v24_v3 = vmax.f32 %v22_v1, 0.0  ;;  %s36_s19 = int_to_ptr.vmem [resolvable:$true] %s35_s19 }
  0x14   :  { %s68_s20 = scalar_lea.vmem %s36_s19, 256  ;;  %p73_p9 = scmp.lt.s32.totalorder %s36_s19, %s36_s19 }
  0x15   :  { %v25_v4 = vmul.f32 %v23_v2, %v23_v2  ;;  %v26_v5 = vmul.f32 %v24_v3, %v24_v3  ;;  %p69_p8 = scmp.ne.s32.totalorder %s36_s19, %s68_s20  ;;  %p74_p10 = scmp.lt.s32.totalorder %s68_s20, %s68_s20 }
  0x17   :  { %27 = vst [vmem:[#allocation5] sm:$0xff] %v25_v4  ;;  %28 = vst [vmem:[#allocation5 + $0x8] sm:$0xff] %v26_v5  ;;  %p75_p11 = por %p74_p10, %p73_p9 }
  0x19   :  { %p76_p12 = pnand %p75_p11, %p69_p8 }
  0x1b   :  { %79 = shalt.err (!%p76_p12)
}
  0x1c   :  { %s80_s22 = scalar_lea.hbm %s131_s1, 256 }
  0x1d   :  { %p81_p13 = scmp.ne.s32.totalorder %s131_s1, %s80_s22  ;;  %p84_p0 = scmp.lt.u32.totalorder %s80_s22, %s131_s1 }
  0x1f   :  { %p86_p1 = pnand %p84_p0, %p81_p13 }
  0x21   :  { %89 = shalt.err (!%p86_p1)
}
  0x22   :  { %38 = dma.vmem_to_hbm [thread:$0]  %s36_s19, 256, %s131_s1, [#allocation4]  }
  0x23   :  { %92 = dma.done.wait [#allocation4], 256  }
  0x24   :  { %93 = vsyncadd [#allocation4], 4294967040 }
  0x25   :  { %42 = vsyncpa [#allocation3], 1 }
  0x26   :  { %43 = vsyncpa [#allocation4], 1 }

</bundles_post_ra>
